<compile_context>
chip_gen: v6e
topology: v6e:2x2x1
jax: 0.10.0
libtpu: 0.0.40
codegen_flags: <defaults>
</compile_context>

<pallas_src>
import functools

import jax
import jax.numpy as jnp
from jax.experimental import pallas as pl
from jax.experimental.pallas import tpu as pltpu

_NCORES = 2  # v7x has 2 TensorCores; extra axis is harmless on 1-TC chips.


def _reasoning_loss_kernel(a_ref, b_ref, out_ref, acc_ref, *, D, tg, spc,
                           groups, used_groups, need_row_mask, need_b_mask):
    """a_ref: (tg, 4*D) group-rows of bn_features; b_ref: (tg, D) rows of
    bn_features2; out_ref: (8, 128) per-core partial sum-of-squares;
    acc_ref: (tg, D) f32 running accumulator (VMEM scratch)."""
    s = pl.program_id(1)

    @pl.when(s == 0)
    def _init():
        acc_ref[...] = jnp.zeros_like(acc_ref)

    b = b_ref[...].astype(jnp.float32)                       # (tg, D)

    if need_row_mask or need_b_mask:
        t = pl.program_id(0) * spc + s                       # logical tile idx
        gidx = t * tg + jax.lax.broadcasted_iota(jnp.int32, (tg, 1), 0)

    if need_b_mask:
        # Groups beyond range(M // 4) compare against zeros (literal module);
        # also neutralizes any clamped / out-of-bounds b rows.
        b = jnp.where(gidx < used_groups, b, 0.0)

    contrib = None
    for j in range(4):                                       # 4 rows per group
        aj = a_ref[:, pl.ds(j * D, D)].astype(jnp.float32)   # (tg, D)
        d = aj - b
        contrib = d * d if contrib is None else contrib + d * d

    if need_row_mask:
        contrib = jnp.where(gidx < groups, contrib, 0.0)     # padded edge rows

    acc_ref[...] += contrib                                  # pure VPU adds

    @pl.when(s == spc - 1)
    def _finalize():
        total = jnp.sum(acc_ref[...])                        # once per core
        out_ref[...] = jnp.zeros_like(out_ref) + total


def reasoning_loss(bn_features, bn_features2):
    """bn_features: [N, D], bn_features2: [M, D] -> scalar f32 Frobenius loss."""
    N, D = bn_features.shape
    M, D2 = bn_features2.shape
    assert D == D2, "feature dims must match"
    assert N % 4 == 0 and N > 0, "bn_features rows must be a multiple of 4"
    # TODO(synk): the PyTorch module tolerates N % 4 != 0 (partial trailing
    # 4-row block); that case is not supported here.

    groups = N // 4                       # 4-row blocks of the target tensor
    used_groups = min(M // 4, groups)     # literal torch loop: range(M // 4)

    # Free, contiguous reshape: one group of 4 rows -> one lane-dense row.
    a2 = bn_features.reshape(groups, 4 * D)

    # ---- generation-aware tile sizing (VMEM budget + per-step HBM bytes) ----
    try:
        vmem_cap = int(pltpu.get_tpu_info().vmem_capacity_bytes)
    except Exception:
        vmem_cap = 64 * 1024 * 1024       # conservative (v7x per-core) fallback
    tile_budget = int(vmem_cap * 0.35)    # double-buffered tiles + accumulator
    isz_a = jnp.dtype(bn_features.dtype).itemsize
    isz_b = jnp.dtype(bn_features2.dtype).itemsize
    # per group-row: 2x-buffered a tile + 2x-buffered b tile + f32 accumulator
    bytes_per_row = D * (8 * isz_a + 2 * isz_b + 4)

    if groups >= 8:
        tg = max(8, ((tile_budget // bytes_per_row) // 8) * 8)
        tg = min(tg, (groups // 8) * 8)   # keep the block within the array
        steps_total = pl.cdiv(groups, tg)
        b_in = bn_features2
        if M < tg:                        # keep b block <= b array (cheap pad)
            b_in = jnp.concatenate(
                [b_in, jnp.zeros((tg - M, D), b_in.dtype)], axis=0)
    else:
        # Tiny inputs: single block; make b exactly `groups` rows so both
        # blocks equal their full array dims (valid block shapes).
        tg = groups
        steps_total = 1
        keep = min(groups, M)
        b_in = bn_features2[:keep]
        if keep < groups:
            b_in = jnp.concatenate(
                [b_in, jnp.zeros((groups - keep, D), b_in.dtype)], axis=0)

    nb_b = pl.cdiv(b_in.shape[0], tg)
    spc = pl.cdiv(steps_total, _NCORES)            # steps per core
    padded_groups = _NCORES * spc * tg
    need_row_mask = padded_groups > groups         # traced only when needed
    need_b_mask = used_groups < padded_groups

    vmem_limit = min(int(vmem_cap * 0.8),
                     max(int(vmem_cap * 0.55),
                         tg * bytes_per_row + (4 << 20)))

    kernel = functools.partial(
        _reasoning_loss_kernel, D=D, tg=tg, spc=spc, groups=groups,
        used_groups=used_groups, need_row_mask=need_row_mask,
        need_b_mask=need_b_mask)

    a_map = lambda c, s: (jnp.minimum(c * spc + s, steps_total - 1), 0)
    b_map = lambda c, s: (jnp.minimum(c * spc + s, nb_b - 1), 0)

    out = pl.pallas_call(
        kernel,
        out_shape=jax.ShapeDtypeStruct((_NCORES * 8, 128), jnp.float32),
        grid=(_NCORES, spc),
        in_specs=[
            pl.BlockSpec((tg, 4 * D), a_map),      # sublane/lane-dense a tile
            pl.BlockSpec((tg, D), b_map),          # sublane-dense b tile
        ],
        out_specs=pl.BlockSpec((8, 128), lambda c, s: (c, 0)),
        scratch_shapes=[pltpu.VMEM((tg, D), jnp.float32)],
        compiler_params=pltpu.CompilerParams(
            dimension_semantics=("parallel", "arbitrary"),
            vmem_limit_bytes=vmem_limit),
    )(a2, b_in)

    partials = out[0::8, 0]                        # one partial per core
    return jnp.sqrt(jnp.sum(partials))


def _reference(a, b):
    """Pure-JAX reference matching the PyTorch module."""
    N, D = a.shape
    K = b.shape[0] // 4
    rows = min(4 * K, N)
    new = jnp.zeros((N, D), jnp.float32)
    if rows > 0:
        new = new.at[:rows].set(
            jnp.repeat(b[:K].astype(jnp.float32), 4, axis=0)[:rows])
    d = a.astype(jnp.float32) - new
    return jnp.sqrt(jnp.sum(d * d))


if __name__ == "__main__":
    key = jax.random.PRNGKey(0)
    # (N, M, D): tiny single-block path, main tiled path, and M != N masking.
    cases = [(8, 8, 32), (32, 32, 64), (32, 16, 64)]
    for idx, (N, M, D) in enumerate(cases):
        ka, kb = jax.random.split(jax.random.fold_in(key, idx))
        bn_features = jax.random.normal(ka, (N, D), dtype=jnp.float32)
        bn_features2 = jax.random.normal(kb, (M, D), dtype=jnp.float32)

        loss = reasoning_loss(bn_features, bn_features2)
        jax.block_until_ready(loss)

        ref = _reference(bn_features, bn_features2)
        assert jnp.allclose(loss, ref, atol=1e-4, rtol=1e-5), (N, M, D, loss, ref)
    print("KERNEL_OK")
</pallas_src>

<mosaic_0001>
module attributes {stable_mosaic.version = 11 : i64} {
  func.func @_reasoning_loss_kernel(%arg0: i32, %arg1: i32, %arg2: memref<2x128xf32, #tpu.memory_space<vmem>>, %arg3: memref<2x32xf32, #tpu.memory_space<vmem>>, %arg4: memref<8x128xf32, #tpu.memory_space<vmem>>, %arg5: memref<2x32xf32, #tpu.memory_space<vmem>>) attributes {dimension_semantics = [#tpu.dimension_semantics<parallel>, #tpu.dimension_semantics<arbitrary>], iteration_bounds = array<i64: 2, 1>, scalar_prefetch = 0 : i64, scratch_operands = 1 : i64, tpu.core_type = #tpu.core_type<tc>, window_params = [{transform_indices = @transform_0, window_bounds = array<i64: 2, 128>}, {transform_indices = @transform_1, window_bounds = array<i64: 2, 32>}, {transform_indices = @transform_2, window_bounds = array<i64: 8, 128>}]} {
    %c0_i32 = arith.constant 0 : i32
    %0 = arith.cmpi eq, %arg1, %c0_i32 : i32
    %1 = arith.extui %0 : i1 to i32
    %c0_i32_0 = arith.constant 0 : i32
    %2 = arith.cmpi ne, %1, %c0_i32_0 : i32
    scf.if %2 {
      %cst_16 = arith.constant 0.000000e+00 : f32
      %43 = vector.broadcast %cst_16 : f32 to vector<2x32xf32>
      %c0_17 = arith.constant 0 : index
      %c0_18 = arith.constant 0 : index
      %44 = vector.load %arg5[%c0_17, %c0_18] : memref<2x32xf32, #tpu.memory_space<vmem>>, vector<2x32xf32>
      tpu.vector_store %arg5[%c0_17, %c0_18], %43 {strides = array<i32>} : memref<2x32xf32, #tpu.memory_space<vmem>>, vector<2x32xf32>,
    } else {
    }
    %c0 = arith.constant 0 : index
    %c0_1 = arith.constant 0 : index
    %3 = vector.load %arg3[%c0, %c0_1] : memref<2x32xf32, #tpu.memory_space<vmem>>, vector<2x32xf32>
    %c1_i32 = arith.constant 1 : i32
    %4 = arith.muli %arg0, %c1_i32 : i32
    %5 = arith.addi %4, %arg1 : i32
    %c2_i32 = arith.constant 2 : i32
    %6 = arith.muli %5, %c2_i32 : i32
    %7 = tpu.iota {dimensions = array<i32: 0>} : vector<2x1xi32>
    %8 = vector.broadcast %6 : i32 to vector<2x1xi32>
    %9 = arith.addi %8, %7 : vector<2x1xi32>
    %c2_i32_2 = arith.constant 2 : i32
    %10 = vector.broadcast %c2_i32_2 : i32 to vector<2x1xi32>
    %11 = arith.cmpi slt, %9, %10 : vector<2x1xi32>
    %cst = arith.constant 0.000000e+00 : f32
    %12 = vector.shape_cast %11 : vector<2x1xi1> to vector<2x1xi1>
    %13 = vector.broadcast %12 : vector<2x1xi1> to vector<2x32xi1>
    %14 = vector.broadcast %cst : f32 to vector<2x32xf32>
    %15 = arith.select %13, %3, %14 : vector<2x32xi1>, vector<2x32xf32>
    %c0_3 = arith.constant 0 : index
    %c0_4 = arith.constant 0 : index
    %16 = vector.load %arg2[%c0_3, %c0_4] : memref<2x128xf32, #tpu.memory_space<vmem>>, vector<2x32xf32>
    %17 = arith.subf %16, %15 : vector<2x32xf32>
    %18 = arith.mulf %17, %17 : vector<2x32xf32>
    %c0_5 = arith.constant 0 : index
    %c32 = arith.constant 32 : index
    %19 = vector.load %arg2[%c0_5, %c32] : memref<2x128xf32, #tpu.memory_space<vmem>>, vector<2x32xf32>
    %20 = arith.subf %19, %15 : vector<2x32xf32>
    %21 = arith.mulf %20, %20 : vector<2x32xf32>
    %22 = arith.addf %18, %21 : vector<2x32xf32>
    %c0_6 = arith.constant 0 : index
    %c64 = arith.constant 64 : index
    %23 = vector.load %arg2[%c0_6, %c64] : memref<2x128xf32, #tpu.memory_space<vmem>>, vector<2x32xf32>
    %24 = arith.subf %23, %15 : vector<2x32xf32>
    %25 = arith.mulf %24, %24 : vector<2x32xf32>
    %26 = arith.addf %22, %25 : vector<2x32xf32>
    %c0_7 = arith.constant 0 : index
    %c96 = arith.constant 96 : index
    %27 = vector.load %arg2[%c0_7, %c96] : memref<2x128xf32, #tpu.memory_space<vmem>>, vector<2x32xf32>
    %28 = arith.subf %27, %15 : vector<2x32xf32>
    %29 = arith.mulf %28, %28 : vector<2x32xf32>
    %30 = arith.addf %26, %29 : vector<2x32xf32>
    %c2_i32_8 = arith.constant 2 : i32
    %31 = vector.broadcast %c2_i32_8 : i32 to vector<2x1xi32>
    %32 = arith.cmpi slt, %9, %31 : vector<2x1xi32>
    %cst_9 = arith.constant 0.000000e+00 : f32
    %33 = vector.shape_cast %32 : vector<2x1xi1> to vector<2x1xi1>
    %34 = vector.broadcast %33 : vector<2x1xi1> to vector<2x32xi1>
    %35 = vector.broadcast %cst_9 : f32 to vector<2x32xf32>
    %36 = arith.select %34, %30, %35 : vector<2x32xi1>, vector<2x32xf32>
    %c0_10 = arith.constant 0 : index
    %c0_11 = arith.constant 0 : index
    %37 = vector.load %arg5[%c0_10, %c0_11] : memref<2x32xf32, #tpu.memory_space<vmem>>, vector<2x32xf32>
    %38 = arith.addf %37, %36 : vector<2x32xf32>
    %c0_12 = arith.constant 0 : index
    %c0_13 = arith.constant 0 : index
    %39 = vector.load %arg5[%c0_12, %c0_13] : memref<2x32xf32, #tpu.memory_space<vmem>>, vector<2x32xf32>
    tpu.vector_store %arg5[%c0_12, %c0_13], %38 {strides = array<i32>} : memref<2x32xf32, #tpu.memory_space<vmem>>, vector<2x32xf32>,
    %c0_i32_14 = arith.constant 0 : i32
    %40 = arith.cmpi eq, %arg1, %c0_i32_14 : i32
    %41 = arith.extui %40 : i1 to i32
    %c0_i32_15 = arith.constant 0 : i32
    %42 = arith.cmpi ne, %41, %c0_i32_15 : i32
    scf.if %42 {
      %c0_16 = arith.constant 0 : index
      %c0_17 = arith.constant 0 : index
      %43 = vector.load %arg5[%c0_16, %c0_17] : memref<2x32xf32, #tpu.memory_space<vmem>>, vector<2x32xf32>
      %44 = vector.shape_cast %43 : vector<2x32xf32> to vector<1x2x32xf32>
      %cst_18 = arith.constant dense<0.000000e+00> : vector<1xf32>
      %45 = vector.multi_reduction <add>, %44, %cst_18 [1, 2] : vector<1x2x32xf32> to vector<1xf32>
      %46 = vector.shape_cast %45 : vector<1xf32> to vector<1x1x1xf32>
      %47 = vector.extract %46[0, 0, 0] : f32 from vector<1x1x1xf32>
      %cst_19 = arith.constant 0.000000e+00 : f32
      %48 = vector.broadcast %cst_19 : f32 to vector<8x128xf32>
      %49 = vector.broadcast %47 : f32 to vector<8x128xf32>
      %50 = arith.addf %48, %49 : vector<8x128xf32>
      %c0_20 = arith.constant 0 : index
      %c0_21 = arith.constant 0 : index
      %51 = vector.load %arg4[%c0_20, %c0_21] : memref<8x128xf32, #tpu.memory_space<vmem>>, vector<8x128xf32>
      tpu.vector_store %arg4[%c0_20, %c0_21], %50 {strides = array<i32>} : memref<8x128xf32, #tpu.memory_space<vmem>>, vector<8x128xf32>,
    } else {
    }
    return
  }
  func.func @transform_0(%arg0: i32, %arg1: i32) -> (i32, i32) {
    %c1_i32 = arith.constant 1 : i32
    %0 = arith.muli %arg0, %c1_i32 : i32
    %1 = arith.addi %0, %arg1 : i32
    %c0_i32 = arith.constant 0 : i32
    %2 = arith.minsi %1, %c0_i32 : i32
    %c0_i32_0 = arith.constant 0 : i32
    %c0_i32_1 = arith.constant 0 : i32
    return %2, %c0_i32_0 : i32, i32
  }
  func.func @transform_1(%arg0: i32, %arg1: i32) -> (i32, i32) {
    %c1_i32 = arith.constant 1 : i32
    %0 = arith.muli %arg0, %c1_i32 : i32
    %1 = arith.addi %0, %arg1 : i32
    %c0_i32 = arith.constant 0 : i32
    %2 = arith.minsi %1, %c0_i32 : i32
    %c0_i32_0 = arith.constant 0 : i32
    %c0_i32_1 = arith.constant 0 : i32
    return %2, %c0_i32_0 : i32, i32
  }
  func.func @transform_2(%arg0: i32, %arg1: i32) -> (i32, i32) {
    %c0_i32 = arith.constant 0 : i32
    %c0_i32_0 = arith.constant 0 : i32
    return %arg0, %c0_i32 : i32, i32
  }
}

</mosaic_0001>

<bundles_post_ra>
// kernel: tpu_custom_call.1
= control target key start
LH: loop header
LB: loop body
LE: loop exit
PB: predicated region body
PF: predicated region fallthrough
CT: control target
= control target key end

     0   :  { %7 = vsyncpa [#allocation4], 0  ;;  %s913_s0 = inlined_call_operand.hbm [shape: f32[2,128], index: 0, kind: input, shape index: {}]   ;;  %s914_s1 = inlined_call_operand.hbm [shape: f32[2,32], index: 1, kind: input, shape index: {}]   ;;  %s915_s2 = inlined_call_operand.hbm [shape: f32[16,128], index: 2, kind: output, shape index: {}]  }
   0x1   :  { %9 = vsyncpa [#allocation4 + $0x1], 0 }
   0x2   :  { %10 = vsyncpa [#allocation7], 0 }
   0x3   :  { %12 = vsyncpa [#allocation7 + $0x1], 0 }
   0x4   :  { %13 = vsyncpa [#allocation5], 0 }
   0x5   :  { %15 = vsyncpa [#allocation5 + $0x1], 0  ;;  %s719_s9 = smov 0   ;;  %s721_s10 = smov 0  }
   0x6   :  { %s723_s11 = smov 0   ;;  %s725_s12 = smov 0  }
   0x7   :  { %s727_s13 = smov 0   ;;  %s729_s14 = smov 0  }
   0x8   :  { %s731_s15 = smov 0   ;;  %s733_s16 = smov 0  }
   0x9 LB: > { %s420_s17 = sadd.s32 4294967295, %s695_s16   ;;  %s421_s18 = sadd.s32 4294967294, %s695_s16   ;;  %s695_s16 = sphi %s733_s16, %s21_s16   ;;  %s691_s15 = sphi %s731_s15, %s936_s15   ;;  %s687_s14 = sphi %s729_s14, %s935_s14   ;;  %s683_s13 = sphi %s727_s13, %s903_s13   ;;  %s679_s12 = sphi %s725_s12, %s934_s12   ;;  %s675_s11 = sphi %s723_s11, %s933_s11   ;;  %s671_s10 = sphi %s721_s10, %s932_s10   ;;  %s667_s9 = sphi %s719_s9, %s931_s9  }
   0xa   : > { %s33_s19 = sadd.s32 1, %s691_s15  ;;  %p664_p1 = scmp.ne.s32.totalorder %s683_s13, 0 }
   0xb   : > { %p35_p0 = scmp.ge.s32.totalorder %s33_s19, 2  ;;  %p54_p2 = scmp.eq.s32.totalorder %s695_s16, 0 }
   0xc   : > { %p59_p3 = scmp.ne.s32.totalorder %s683_s13, %s679_s12  ;;  %p60_p5 = scmp.eq.s32.totalorder %s420_s17, 0 }
   0xd   : > { %s938_s19 = smov (%p35_p0, %s33_s19), 0  ;;  %p765_p4 = por %p664_p1, %p54_p2 }
   0xe   : > { %p769_p6 = por %p60_p5, %p59_p3  ;;  %s101_s22 = ssub.s32 %s691_s15, %s938_s19 }
   0xf   : > { %p102_p7 = scmp.eq.s32.totalorder %s101_s22, 0  ;;  %s104_s23 = sadd.s32 1, %s675_s11 }
  0x10   : > { %s919_s21 = scalar_select %p769_p6, 1, 0 }
  0x11   : > { %s777_s24 = scalar_select %p102_p7, %s675_s11, %s104_s23  }
  0x12   : > { %p114_p8 = scmp.ne.s32.totalorder %s675_s11, %s671_s10  ;;  %p115_p9 = scmp.eq.s32.totalorder %s420_s17, 1 }
  0x13   : > { %p120_p10 = scmp.ne.s32.totalorder %s671_s10, %s667_s9  ;;  %p121_p11 = scmp.eq.s32.totalorder %s421_s18, 1 }
  0x14   : > { %p783_p12 = por %p115_p9, %p114_p8  ;;  %p456_p1 = scmp.lt.s32.totalorder %s695_s16, 2 }
  0x15   : > { %p788_p0 = por %p121_p11, %p120_p10  ;;  %s697_s27 = smov [#allocation3]  }
  0x16   : > { %s920_s25 = scalar_select %p783_p12, 1, 0 }
  0x17   : > { %s921_s26 = scalar_select %p788_p0, 1, 0 }
  0x18   : > { %s155_s28 = sshll.u32 %s697_s27, 4  ;;  %p795_p2 = pnand %p456_p1, %p765_p4  ;;  %s156_s28 = int_to_ptr.vmem [resolvable:$true] %s155_s28 }
  0x19   : > { %s534_s4 = scalar_lea.hbm %s913_s0, 32 }
  0x1a   : > { %p535_p7 = scmp.ne.s32.totalorder %s913_s0, %s534_s4  ;;  %p536_p8 = pneg %p795_p2 }
  0x1b   : > { %p541_p10 = scmp.lt.s32.totalorder %s534_s4, %s534_s4 }
  0x1c   : > { %p537_p4 = pnand %p536_p8, %p535_p7 }
  0x1e   : > { %p538_p9 = pneg %p537_p4 }
  0x20   : > { %p543_p11 = pnand %p541_p10, %p538_p9 }
  0x22   : > { %546 = shalt.err (!%p543_p11)
}
  0x23   : > { %s547_s7 = scalar_lea.vmem %s156_s28, 32  ;;  %s554_s8 = scalar_lea.vmem %s156_s28, 64 }
  0x24   : > { %p548_p1 = scmp.ne.s32.totalorder %s156_s28, %s547_s7  ;;  %p555_p5 = scmp.lt.s32.totalorder %s156_s28, %s156_s28 }
  0x25   : > { %p556_p0 = scmp.lt.s32.totalorder %s554_s8, %s547_s7 }
  0x26   : > { %p550_p13 = pnand %p548_p1, %p536_p8 }
  0x27   : > { %p557_p12 = por %p556_p0, %p555_p5 }
  0x28   : > { %p551_p3 = pneg %p550_p13 }
  0x2a   : > { %p558_p6 = pnand %p557_p12, %p551_p3 }
  0x2c   : > { %561 = shalt.err (!%p558_p6)
}
  0x2d   : > { %448 = dma.hbm_to_vmem [thread:$0]  (!%p795_p2), %s913_s0, 32, %s156_s28, [#allocation4]  }
  0x2e   : > { %p923_p7 = scmp.lt.s32.totalorder %s695_s16, 3  ;;  %p924_p4 = scmp.ge.s32.totalorder %s695_s16, 1 }
  0x2f   : > { %s698_s20 = smov [#allocation6]   ;;  %s562_s30 = scalar_lea.hbm %s914_s1, 32 }
  0x30   : > { %p824_p9 = pnand %p924_p4, %p923_p7  ;;  %s176_s22 = sshll.u32 %s698_s20, 4  ;;  %s177_s22 = int_to_ptr.vmem [resolvable:$true] %s176_s22 }
  0x31   : > { %p563_p6 = scmp.ne.s32.totalorder %s914_s1, %s562_s30  ;;  %p569_p0 = scmp.lt.s32.totalorder %s562_s30, %s562_s30 }
  0x32   : > { %s925_s18 = scalar_select %p824_p9, 1, 0 }
  0x33   : > { %p565_p12 = pnand %p563_p6, %p536_p8 }
  0x35   : > { %p566_p13 = pneg %p565_p12 }
  0x37   : > { %p571_p3 = pnand %p569_p0, %p566_p13 }
  0x39   : > { %574 = shalt.err (!%p571_p3)
}
  0x3a   : > { %s575_s28 = scalar_lea.vmem %s177_s22, 32  ;;  %s582_s5 = scalar_lea.vmem %s177_s22, 64 }
  0x3b   : > { %p576_p5 = scmp.ne.s32.totalorder %s177_s22, %s575_s28  ;;  %p583_p1 = scmp.lt.s32.totalorder %s177_s22, %s177_s22 }
  0x3c   : > { %p584_p7 = scmp.lt.s32.totalorder %s582_s5, %s575_s28 }
  0x3d   : > { %p578_p10 = pnand %p576_p5, %p536_p8 }
  0x3e   : > { %p585_p4 = por %p584_p7, %p583_p1 }
  0x3f   : > { %p579_p11 = pneg %p578_p10 }
  0x41   : > { %p586_p9 = pnand %p585_p4, %p579_p11 }
  0x43   : > { %589 = shalt.err (!%p586_p9)
}
  0x44   : > { %451 = dma.hbm_to_vmem [thread:$0]  (!%p795_p2), %s914_s1, 32, %s177_s22, [#allocation7]  }
  0x45   : > { %p926_p6 = scmp.ne.s32.totalorder %s925_s18, 0 }
  0x46   : > { %s187_s8 = sand.u32 (!%p926_p6), 1, %s683_s13   ;;  %p927_p8 = scmp.ne.s32.totalorder (!%p926_p6), %s919_s21, 0 }
  0x47   : > { %185 = sbr.rel (%p926_p6) target bundleno = 555 (0x22b), region = 28  ;;  %s429_s12 = sshll.u32 (!%p926_p6), %s187_s8, 1 }
  0x48   : > { %s188_s17 = scalar_lea.sflag (!%p926_p6), [#allocation4], %s187_s8  ;;  %s191_s20 = scalar_lea.vmem (!%p926_p6), [#allocation3], %s429_s12 }
  0x4c   : > { %653 = dma.done.wait (%p927_p8), %s188_s17, 32  }
  0x4d   : > { %655 = vsyncadd (%p927_p8), %s188_s17, 4294967264  ;;  %s197_s29 = scalar_lea.sflag [#allocation7], %s187_s8  ;;  %s200_s23 = scalar_lea.vmem [#allocation6], %s429_s12 }
  0x4e   : > { %657 = dma.done.wait (%p927_p8), %s197_s29, 32  }
  0x4f   : > { %659 = vsyncadd (%p927_p8), %s197_s29, 4294967264  ;;  %s432_s18 = sshll.u32 %s687_s14, 1  ;;  %v241_v0 = vlaneseq  ;;  %v238_v4 = vld [vmem:[%s200_s23] sm:$0x3]  ;;  %s699_s22 = smov 32   ;;  %vm236_vm1 = vcmask 254976  }
  0x50   : > { %v243_v1 = vstv %s432_s18  ;;  %s700_s27 = smov 96   ;;  %s701_s30 = smov 64   ;;  %v702_v6 = vmov 0.0   ;;  %v249_v7 = vld [vmem:[%s191_s20] sm:$0x3] }
  0x51   : > { %v242_v2 = vshrl.u32 %v241_v0, 7  ;;  %237 = vst.msk [vmem:[#allocation2] sm:$0x3] %vm236_vm1, %v702_v6  ;;  %s223_s21 = sand.u32 1, %s671_s10   ;;  %s434_s5 = sshll.u32 %s687_s14, 7 }
  0x52   : > { %s431_s3 = sshll.u32 %s223_s21, 3  ;;  %s317_s12 = scalar_lea.hbm %s915_s2, %s434_s5 }
  0x53   : > { %v244_v3 = vadd.s32 %v243_v1, %v242_v2  ;;  %s225_s4 = scalar_lea.vmem [#allocation8], %s431_s3  ;;  %s306_s17 = scalar_lea.sflag [#allocation5], %s223_s21 }
  0x54   : > { %s319_s28 = sshll.u32 %s225_s4, 4  ;;  %p928_p9 = scmp.ne.s32.totalorder %s920_s25, 0  ;;  %s864_s28 = int_to_ptr.vmem [resolvable:$true] %s319_s28 }
  0x55   : > { %vm245_vm0 = vcmp.lt.s32.totalorder %v244_v3, 2  ;;  %s590_s20 = scalar_lea.vmem %s864_s28, 128  ;;  %s703_s29 = smov [#allocation8]  }
  0x56   : > { %v248_v5 = vsel %vm245_vm0, %v238_v4, 0.0  ;;  %p591_p2 = scmp.ne.s32.totalorder %s864_s28, %s590_s20  ;;  %s594_s14 = sshll.u32 %s703_s29, 4  ;;  %s595_s14 = int_to_ptr.vmem [resolvable:$false] %s594_s14 }
  0x57   : > { %253 = vrot.lane.b32.xlu0 %v248_v5, %s699_s22  ;;  %273 = vrot.lane.b32.xlu1 %v248_v5, %s700_s27  ;;  %v250_v17 = vsub.f32 %v249_v7, %v248_v5  ;;  %s596_s23 = scalar_lea.vmem %s595_s14, 256  ;;  %p597_p0 = scmp.lt.s32.totalorder %s864_s28, %s595_s14 }
  0x58   : > { %v284_v25 = vld [vmem:[#allocation2] sm:$0x3]  ;;  %p592_p12 = pnand %p591_p2, %p928_p9  ;;  %p598_p3 = scmp.lt.s32.totalorder %s596_s23, %s590_s20 }
  0x59   : > { %v251_v18 = vmul.f32 %v250_v17, %v250_v17 }
  0x5a   : > { %p593_p13 = pneg %p592_p12  ;;  %p599_p5 = por %p598_p3, %p597_p0 }
  0x5b   : > { %263 = vrot.lane.b32.xlu0 %v248_v5, %s701_s30 }
  0x5c   : > { %p600_p10 = pnand %p599_p5, %p593_p13 }
  0xc9   : > { %v254_v8 = vpop.permute.xlu0 %253  ;;  %v274_v9 = vpop.permute.xlu1 %273 }
  0xca   : > { %v256_v10 = vsub.f32 %v249_v7, %v254_v8  ;;  %v276_v11 = vsub.f32 %v249_v7, %v274_v9 }
  0xcc   : > { %v257_v12 = vmul.f32 %v256_v10, %v256_v10  ;;  %v277_v15 = vmul.f32 %v276_v11, %v276_v11 }
  0xcd   : > { %v264_v13 = vpop.permute.xlu0 %263 }
  0xce   : > { %v266_v14 = vsub.f32 %v249_v7, %v264_v13  ;;  %259 = vrot.lane.b32.xlu1 %v257_v12, %s700_s27 }
  0xd0   : > { %v267_v16 = vmul.f32 %v266_v14, %v266_v14 }
  0xd2   : > { %269 = vrot.lane.b32.xlu0 %v267_v16, %s701_s30  ;;  %279 = vrot.lane.b32.xlu1 %v277_v15, %s699_s22 }
 0x140   : > { %v260_v19 = vpop.permute.xlu1 %259 }
 0x141   : > { %v262_v20 = vadd.f32 %v260_v19, %v251_v18 }
 0x144   : > { %v270_v21 = vpop.permute.xlu0 %269  ;;  %v280_v22 = vpop.permute.xlu1 %279 }
 0x145   : > { %v272_v23 = vadd.f32 %v270_v21, %v262_v20 }
 0x147   : > { %v282_v24 = vadd.f32 %v280_v22, %v272_v23 }
 0x149   : > { %v283_v26 = vsel %vm245_vm0, %v282_v24, 0.0 }
 0x14a   : > { %v285_v27 = vadd.f32 %v284_v25, %v283_v26 }
 0x14c   : > { %287 = vst.msk [vmem:[#allocation2] sm:$0x3] %vm236_vm1, %v285_v27 }
 0x153   : > { %v291_v28 = vld [vmem:[#allocation2] sm:$0x3] }
 0x154   : > { %v292_v29 = vsel %vm236_vm1, %v291_v28, 0.0 }
 0x155   : > { %293 = vadd.xlane.f32.xlu0 %v292_v29 }
 0x1de   : > { %v294_v30 = vpop.xlane.xlu0 %293 }
 0x1df   : > { %v295_v31 = vrot.slane %v294_v30, 4 }
 0x1e1   : > { %v296_v32 = vadd.f32 %v295_v31, %v294_v30 }
 0x1e3   : > { %v297_v33 = vrot.slane %v296_v32, 2 }
 0x1e5   : > { %v298_v34 = vadd.f32 %v297_v33, %v296_v32 }
 0x1e7   : > { %v299_v35 = vrot.slane %v298_v34, 1 }
 0x1e9   : > { %v300_v36 = vadd.f32 %v299_v35, %v298_v34 }
 0x1eb   : > { %437 = vpush %v300_v36 }
 0x21c   : > { %s438_s6 = spop %437 }
 0x21d   : > { %v302_v37 = vstv %s438_s6 }
 0x21e   : > { %304 = vst [vmem:[%s225_s4] sm:$0xff] %v302_v37 }
 0x21f   : > { %603 = shalt.err (!%p600_p10)
}
 0x220   : > { %s604_s18 = scalar_lea.hbm %s317_s12, 128  ;;  %s608_s30 = scalar_lea.hbm %s915_s2, 256 }
 0x221   : > { %p605_p11 = scmp.ne.s32.totalorder %s317_s12, %s604_s18  ;;  %p609_p4 = scmp.lt.s32.totalorder %s317_s12, %s915_s2 }
 0x222   : > { %p610_p6 = scmp.lt.s32.totalorder %s608_s30, %s604_s18 }
 0x223   : > { %p606_p1 = pnand %p605_p11, %p928_p9 }
 0x224   : > { %p611_p8 = por %p610_p6, %p609_p4 }
 0x225   : > { %p607_p7 = pneg %p606_p1 }
 0x227   : > { %p612_p2 = pnand %p611_p8, %p607_p7 }
 0x229   : > { %615 = shalt.err (!%p612_p2)
}
 0x22a   : > { %443 = dma.vmem_to_hbm [thread:$0]  (%p928_p9), %s864_s28, 128, %s317_s12, %s306_s17  }
 0x22b PF: > { %s331_s4 = sand.u32 1, %s667_s9   ;;  %p929_p12 = scmp.ne.s32.totalorder %s921_s26, 0 }
 0x22c   : > { %p930_p13 = scmp.ge.s32.totalorder %s695_s16, 2  ;;  %s332_s5 = scalar_lea.sflag [#allocation5], %s331_s4 }
 0x22e   : > { %p453_p0 = pnand %p930_p13, %p929_p12 }
 0x230   : > { %p454_p3 = pneg %p453_p0 }
 0x232   : > { %661 = dma.done.wait (%p454_p3), %s332_s5, 128  }
 0x233   : > { %663 = vsyncadd (%p454_p3), %s332_s5, 4294967168  ;;  %s21_s16 = sadd.s32 1, %s695_s16   ;;  %s931_s9 = smov %s671_s10 }
 0x234   : > { %p18_p5 = scmp.ge.s32.totalorder %s21_s16, 4   ;;  %s932_s10 = smov %s675_s11 }
 0x235   : > { %s933_s11 = smov %s777_s24  ;;  %s934_s12 = smov %s683_s13 }
 0x236   : > { %s903_s13 = smov 0   ;;  %s935_s14 = smov %s691_s15 }
 0x237   : > { %s936_s15 = smov %s938_s19  ;;  %20 = sbr.rel (!%p18_p5) target bundleno = 9 (0x9), region = 94 }
 0x23c   :  { %337 = vsyncpa [#allocation4], 1 }
 0x23d   :  { %339 = vsyncpa [#allocation4 + $0x1], 1 }
 0x23e   :  { %340 = vsyncpa [#allocation7], 1 }
 0x23f   :  { %342 = vsyncpa [#allocation7 + $0x1], 1 }
 0x240   :  { %343 = vsyncpa [#allocation5], 1 }
 0x241   :  { %345 = vsyncpa [#allocation5 + $0x1], 1 }

</bundles_post_ra>
